<compile_context>
chip_gen: v5e
topology: v5e:2x2
jax: 0.10.0
libtpu: 0.0.40
codegen_flags: <defaults>
</compile_context>

<pallas_src>
import functools

import jax
import jax.numpy as jnp
from jax import lax
from jax.experimental import pallas as pl
from jax.experimental.pallas import tpu as pltpu


def _sdpa_kernel(q_ref, k_ref, v_ref, o_ref, *, scale):
    # Blocks are (1, 1, S, D) for the current (batch, head); drop the singletons.
    q = q_ref[0, 0] * scale          # (Sq, D)  scale folded in once (VPU)
    k = k_ref[0, 0]                  # (Sk, D)
    v = v_ref[0, 0]                  # (Sk, D)

    # scores = Q @ K^T without materializing a transpose: contract feature axis
    # of both operands directly on the MXU.
    s = lax.dot_general(
        q, k,
        dimension_numbers=(((1,), (1,)), ((), ())),
        preferred_element_type=jnp.float32,
    )                                # (Sq, Sk)

    # Numerically stable softmax along the key axis.
    m = jnp.max(s, axis=-1, keepdims=True)
    p = jnp.exp(s - m)
    l = jnp.sum(p, axis=-1, keepdims=True)
    p = p * pl.reciprocal(l, approx=False)

    out = jnp.dot(p.astype(v.dtype), v, preferred_element_type=jnp.float32)
    o_ref[0, 0, :, :] = out.astype(o_ref.dtype)


def scaled_dot_product_attention(query, key, value):
    """query/key/value: float32[B, H, S, D] -> float32[B, H, Sq, D]."""
    B, H, Sq, D = query.shape
    Bk, Hk, Sk, Dk = key.shape
    assert (B, H, D) == (Bk, Hk, Dk), (query.shape, key.shape)
    assert value.shape == (B, H, Sk, D), value.shape
    scale = 1.0 / (D ** 0.5)

    kernel = functools.partial(_sdpa_kernel, scale=scale)
    return pl.pallas_call(
        kernel,
        out_shape=jax.ShapeDtypeStruct((B, H, Sq, D), query.dtype),
        grid_spec=pltpu.PrefetchScalarGridSpec(
            num_scalar_prefetch=0,
            grid=(B, H),
            in_specs=[
                pl.BlockSpec((1, 1, Sq, D), lambda b, h: (b, h, 0, 0)),
                pl.BlockSpec((1, 1, Sk, D), lambda b, h: (b, h, 0, 0)),
                pl.BlockSpec((1, 1, Sk, D), lambda b, h: (b, h, 0, 0)),
            ],
            out_specs=pl.BlockSpec((1, 1, Sq, D), lambda b, h: (b, h, 0, 0)),
        ),
        compiler_params=pltpu.CompilerParams(
            dimension_semantics=("parallel", "parallel")),
    )(query, key, value)


if __name__ == "__main__":
    # Small shapes consistent with the module: batch=2, heads=4, seq=8, head_dim=32.
    B, H, Sq, Skv, D = 2, 4, 8, 8, 32

    rng = jax.random.PRNGKey(0)
    kq, kk, kv = jax.random.split(rng, 3)
    q = jax.random.normal(kq, (B, H, Sq, D), dtype=jnp.float32)
    k = jax.random.normal(kk, (B, H, Skv, D), dtype=jnp.float32)
    v = jax.random.normal(kv, (B, H, Skv, D), dtype=jnp.float32)

    out = jax.block_until_ready(scaled_dot_product_attention(q, k, v))

    # Pure-JAX reference (same semantics as torch SDPA with default args).
    scale = 1.0 / (D ** 0.5)
    s = jnp.einsum("bhqd,bhkd->bhqk", q, k) * scale
    p = jax.nn.softmax(s, axis=-1)
    ref = jnp.einsum("bhqk,bhkd->bhqd", p, v)

    assert out.shape == ref.shape, (out.shape, ref.shape)
    assert jnp.allclose(out, ref, atol=1e-3, rtol=1e-3), float(
        jnp.max(jnp.abs(out - ref)))
    print("KERNEL_OK")
</pallas_src>

<mosaic_0001>
module attributes {stable_mosaic.version = 11 : i64} {
  func.func @_sdpa_kernel(%arg0: i32, %arg1: i32, %arg2: memref<1x1x8x32xf32, #tpu.memory_space<vmem>>, %arg3: memref<1x1x8x32xf32, #tpu.memory_space<vmem>>, %arg4: memref<1x1x8x32xf32, #tpu.memory_space<vmem>>, %arg5: memref<1x1x8x32xf32, #tpu.memory_space<vmem>>) attributes {dimension_semantics = [#tpu.dimension_semantics<parallel>, #tpu.dimension_semantics<parallel>], iteration_bounds = array<i64: 2, 4>, scalar_prefetch = 0 : i64, scratch_operands = 0 : i64, tpu.core_type = #tpu.core_type<tc>, window_params = [{transform_indices = @transform_0, window_bounds = array<i64: 1, 1, 8, 32>}, {transform_indices = @transform_1, window_bounds = array<i64: 1, 1, 8, 32>}, {transform_indices = @transform_2, window_bounds = array<i64: 1, 1, 8, 32>}, {transform_indices = @transform_3, window_bounds = array<i64: 1, 1, 8, 32>}]} {
    %c0 = arith.constant 0 : index
    %c0_0 = arith.constant 0 : index
    %c0_1 = arith.constant 0 : index
    %c0_2 = arith.constant 0 : index
    %0 = vector.load %arg2[%c0, %c0_0, %c0_1, %c0_2] : memref<1x1x8x32xf32, #tpu.memory_space<vmem>>, vector<1x1x8x32xf32>
    %1 = vector.shape_cast %0 : vector<1x1x8x32xf32> to vector<8x32xf32>
    %cst = arith.constant 0.176776692 : f32
    %2 = vector.broadcast %cst : f32 to vector<8x32xf32>
    %3 = arith.mulf %1, %2 : vector<8x32xf32>
    %c0_3 = arith.constant 0 : index
    %c0_4 = arith.constant 0 : index
    %c0_5 = arith.constant 0 : index
    %c0_6 = arith.constant 0 : index
    %4 = vector.load %arg3[%c0_3, %c0_4, %c0_5, %c0_6] : memref<1x1x8x32xf32, #tpu.memory_space<vmem>>, vector<1x1x8x32xf32>
    %5 = vector.shape_cast %4 : vector<1x1x8x32xf32> to vector<8x32xf32>
    %c0_7 = arith.constant 0 : index
    %c0_8 = arith.constant 0 : index
    %c0_9 = arith.constant 0 : index
    %c0_10 = arith.constant 0 : index
    %6 = vector.load %arg4[%c0_7, %c0_8, %c0_9, %c0_10] : memref<1x1x8x32xf32, #tpu.memory_space<vmem>>, vector<1x1x8x32xf32>
    %7 = vector.shape_cast %6 : vector<1x1x8x32xf32> to vector<8x32xf32>
    %cst_11 = arith.constant dense<0.000000e+00> : vector<8x8xf32>
    %8 = tpu.matmul %3, %5, %cst_11 {dimension_numbers = #tpu.dot_dimension_numbers<[1], [1], [0], [0], [0, 0, 1, 0], [], []>} : vector<8x32xf32>, vector<8x32xf32>, vector<8x8xf32> -> vector<8x8xf32>
    %cst_12 = arith.constant dense<0xFF800000> : vector<8xf32>
    %9 = vector.multi_reduction <maximumf>, %8, %cst_12 [1] : vector<8x8xf32> to vector<8xf32>
    %10 = vector.shape_cast %9 : vector<8xf32> to vector<8x1xf32>
    %11 = vector.broadcast %10 : vector<8x1xf32> to vector<8x8xf32>
    %12 = arith.subf %8, %11 : vector<8x8xf32>
    %13 = math.exp %12 : vector<8x8xf32>
    %cst_13 = arith.constant dense<0.000000e+00> : vector<8xf32>
    %14 = vector.multi_reduction <add>, %13, %cst_13 [1] : vector<8x8xf32> to vector<8xf32>
    %15 = vector.shape_cast %14 : vector<8xf32> to vector<8x1xf32>
    %16 = tpu.reciprocal %15 : vector<8x1xf32> -> vector<8x1xf32>
    %17 = vector.broadcast %16 : vector<8x1xf32> to vector<8x8xf32>
    %18 = arith.mulf %13, %17 : vector<8x8xf32>
    %cst_14 = arith.constant dense<0.000000e+00> : vector<8x32xf32>
    %19 = tpu.matmul %18, %7, %cst_14 {dimension_numbers = #tpu.dot_dimension_numbers<[1], [0], [0], [1], [0, 0, 1, 1], [], []>} : vector<8x8xf32>, vector<8x32xf32>, vector<8x32xf32> -> vector<8x32xf32>
    %c0_15 = arith.constant 0 : index
    %c0_16 = arith.constant 0 : index
    %c0_17 = arith.constant 0 : index
    %c0_18 = arith.constant 0 : index
    %20 = vector.load %arg5[%c0_15, %c0_16, %c0_17, %c0_18] : memref<1x1x8x32xf32, #tpu.memory_space<vmem>>, vector<1x1x8x32xf32>
    %21 = vector.shape_cast %20 : vector<1x1x8x32xf32> to vector<8x32xf32>
    %22 = vector.shape_cast %19 : vector<8x32xf32> to vector<1x1x8x32xf32>
    tpu.vector_store %arg5[%c0_15, %c0_16, %c0_17, %c0_18], %22 {strides = array<i32>} : memref<1x1x8x32xf32, #tpu.memory_space<vmem>>, vector<1x1x8x32xf32>,
    return
  }
  func.func @transform_0(%arg0: i32, %arg1: i32) -> (i32, i32, i32, i32) {
    %c0_i32 = arith.constant 0 : i32
    %c0_i32_0 = arith.constant 0 : i32
    %c0_i32_1 = arith.constant 0 : i32
    return %arg0, %arg1, %c0_i32, %c0_i32_0 : i32, i32, i32, i32
  }
  func.func @transform_1(%arg0: i32, %arg1: i32) -> (i32, i32, i32, i32) {
    %c0_i32 = arith.constant 0 : i32
    %c0_i32_0 = arith.constant 0 : i32
    %c0_i32_1 = arith.constant 0 : i32
    return %arg0, %arg1, %c0_i32, %c0_i32_0 : i32, i32, i32, i32
  }
  func.func @transform_2(%arg0: i32, %arg1: i32) -> (i32, i32, i32, i32) {
    %c0_i32 = arith.constant 0 : i32
    %c0_i32_0 = arith.constant 0 : i32
    %c0_i32_1 = arith.constant 0 : i32
    return %arg0, %arg1, %c0_i32, %c0_i32_0 : i32, i32, i32, i32
  }
  func.func @transform_3(%arg0: i32, %arg1: i32) -> (i32, i32, i32, i32) {
    %c0_i32 = arith.constant 0 : i32
    %c0_i32_0 = arith.constant 0 : i32
    %c0_i32_1 = arith.constant 0 : i32
    return %arg0, %arg1, %c0_i32, %c0_i32_0 : i32, i32, i32, i32
  }
}

</mosaic_0001>

<bundles_post_ra>
// kernel: tpu_custom_call.1
= control target key start
LH: loop header
LB: loop body
LE: loop exit
PB: predicated region body
PF: predicated region fallthrough
CT: control target
= control target key end

     0   :  { %s1037_s0 = inlined_call_operand.hbm [shape: f32[2,4,8,32], index: 0, kind: input, shape index: {}]   ;;  %s1038_s1 = inlined_call_operand.hbm [shape: f32[2,4,8,32], index: 1, kind: input, shape index: {}]   ;;  %s1039_s2 = inlined_call_operand.hbm [shape: f32[2,4,8,32], index: 2, kind: input, shape index: {}]   ;;  %s1040_s3 = inlined_call_operand.hbm [shape: f32[2,4,8,32], index: 3, kind: output, shape index: {}]  }
   0x1   :  { %1046 = sst [smem:[#allocation18_spill]] %s1038_s1 }
   0x2   :  { %8 = vsyncpa [#allocation3], 0 }
   0x3   :  { %10 = vsyncpa [#allocation3 + $0x1], 0 }
   0x4   :  { %11 = vsyncpa [#allocation6], 0 }
   0x5   :  { %13 = vsyncpa [#allocation6 + $0x1], 0 }
   0x6   :  { %14 = vsyncpa [#allocation4], 0 }
   0x7   :  { %16 = vsyncpa [#allocation4 + $0x1], 0  ;;  %s851_s12 = smov 0   ;;  %s853_s13 = smov 0  }
   0x8   :  { %s855_s14 = smov 0   ;;  %s857_s15 = smov 0  }
   0x9   :  { %s859_s16 = smov 0   ;;  %s861_s17 = smov 0  }
   0xa   :  { %s863_s18 = smov 0   ;;  %s865_s19 = smov 0  }
   0xb LB: > { %1047 = sst [smem:[#allocation12_spill]] %s809_s14  ;;  %s892_s20 = sadd.s32 4294967295, %s829_s19   ;;  %s829_s19 = sphi %s865_s19, %s22_s19   ;;  %s825_s18 = sphi %s863_s18, %s1065_s18   ;;  %s821_s17 = sphi %s861_s17, %s1069_s17   ;;  %s817_s16 = sphi %s859_s16, %s1063_s16   ;;  %s813_s15 = sphi %s857_s15, %s1062_s15   ;;  %s809_s14 = sphi %s855_s14, %s1068_s14   ;;  %s805_s13 = sphi %s853_s13, %s1067_s13   ;;  %s801_s12 = sphi %s851_s12, %s1066_s12  }
   0xc   : > { %1048 = sst [smem:[#allocation13_spill]] %s821_s17  ;;  %s520_s21 = sadd.s32 4294967294, %s829_s19  }
   0xd   : > { %1049 = sst [smem:[#allocation14_spill]] %s825_s18  ;;  %s31_s22 = sadd.s32 1, %s821_s17 }
   0xe   : > { %s34_s23 = sadd.s32 1, %s825_s18  ;;  %p32_p0 = scmp.ge.s32.totalorder %s31_s22, 4 }
   0xf   : > { %s43_s24 = sadd.s32 1, %s809_s14  ;;  %p50_p1 = scmp.ne.s32.totalorder %s809_s14, %s805_s13 }
  0x10   : > { %p51_p2 = scmp.eq.s32.totalorder %s829_s19, 0  ;;  %s1071_s22 = smov (%p32_p0, %s31_s22), 0 }
  0x11   : > { %1050 = sst [smem:[#allocation15_spill]] %s1071_s22  ;;  %s1073_s23 = smov (!%p32_p0, %s34_s23), %s825_s18 }
  0x12   : > { %s39_s25 = ssub.s32 %s821_s17, %s1071_s22  ;;  %p906_p3 = por %p51_p2, %p50_p1 }
  0x13   : > { %p36_p4 = scmp.ge.s32.totalorder %s1073_s23, 2  ;;  %p56_p5 = scmp.ne.s32.totalorder %s805_s13, %s801_s12 }
  0x14   : > { %p57_p6 = scmp.eq.s32.totalorder %s892_s20, 0  ;;  %p138_p7 = scmp.eq.s32.totalorder %s892_s20, 7 }
  0x15   : > { %s1075_s23 = smov (%p36_p4, %s1073_s23), 0  ;;  %p144_p10 = scmp.eq.s32.totalorder %s520_s21, 7 }
  0x16   : > { %1052 = sst [smem:[#allocation16_spill]] %s1075_s23  ;;  %p916_p8 = por %p57_p6, %p56_p5 }
  0x17   : > { %p920_p9 = por %p138_p7, %p50_p1  ;;  %s38_s29 = ssub.s32 %s825_s18, %s1075_s23 }
  0x18   : > { %s40_s30 = sor.u32 %s39_s25, %s38_s29  ;;  %p926_p12 = por %p144_p10, %p56_p5 }
  0x19   : > { %p41_p11 = scmp.eq.s32.totalorder %s40_s30, 0  ;;  %p567_p13 = scmp.lt.s32.totalorder %s829_s19, 8 }
  0x1a   : > { %s164_s5 = sand.u32 1, %s809_s14   ;;  %s524_s8 = sshll.u32 %s825_s18, 2 }
  0x1b   : > { %s933_s6 = scalar_select %p41_p11, %s809_s14, %s43_s24  }
  0x1c   : > { %s523_s7 = sshll.u32 %s164_s5, 3  ;;  %s172_s9 = sadd.s32 %s821_s17, %s524_s8 }
  0x1d   : > { %1056 = sst [smem:[#allocation17_spill]] %s933_s6  ;;  %p939_p0 = pnand %p567_p13, %p906_p3 }
  0x1e   : > { %s525_s11 = sshll.u32 %s172_s9, 3  ;;  %s185_s21 = sand.u32 1, %s829_s19  }
  0x1f   : > { %s1058_s1 = sld [smem:[#allocation18_spill]]  ;;  %s189_s22 = scalar_lea.vmem [#allocation5], %s523_s7 }
  0x20   : > { %s199_s24 = sshll.u32 %s189_s22, 4  ;;  %s186_s18 = scalar_lea.sflag [#allocation6], %s185_s21  ;;  %s200_s24 = int_to_ptr.vmem [resolvable:$true] %s199_s24 }
  0x21   : > { %p532_p1 = scmp.ge.s32.totalorder %s829_s19, 1  ;;  %p225_p2 = scmp.lt.s32.totalorder %s829_s19, 9 }
  0x22   : > { %s174_s25 = scalar_lea.hbm %s1037_s0, %s525_s11  ;;  %s165_s22 = scalar_lea.sflag [#allocation3], %s164_s5 }
  0x23   : > { %p951_p3 = pnand %p532_p1, %p225_p2  ;;  %s176_s29 = sshll.u32 %s174_s25, 4  ;;  %s177_s29 = int_to_ptr.hbm [resolvable:$true] %s176_s29 }
  0x24   : > { %s210_s6 = scalar_lea.vmem [#allocation7], %s523_s7  ;;  %s968_s8 = sand.u32 (!%p951_p3), 1, %s805_s13  }
  0x25   : > { %s195_s30 = scalar_lea.hbm %s1058_s1, %s525_s11  ;;  %s220_s14 = sshll.u32 %s210_s6, 4  ;;  %s221_s14 = int_to_ptr.vmem [resolvable:$true] %s220_s14 }
  0x26   : > { %s197_s23 = sshll.u32 %s195_s30, 4  ;;  %s168_s30 = scalar_lea.vmem [#allocation2], %s523_s7  ;;  %s198_s23 = int_to_ptr.hbm [resolvable:$true] %s197_s23 }
  0x27   : > { %559 = dma.hbm_to_vmem [thread:$0]  (!%p939_p0), %s198_s23, 128, %s200_s24, %s186_s18  }
  0x28   : > { %s178_s1 = sshll.u32 %s168_s30, 4  ;;  %s216_s24 = scalar_lea.hbm %s1039_s2, %s525_s11  ;;  %s179_s1 = int_to_ptr.vmem [resolvable:$true] %s178_s1 }
  0x29   : > { %556 = dma.hbm_to_vmem [thread:$0]  (!%p939_p0), %s177_s29, 128, %s179_s1, %s165_s22  }
  0x2a   : > { %s218_s17 = sshll.u32 %s216_s24, 4  ;;  %229 = sbr.rel (%p951_p3) target bundleno = 574 (0x23e), region = 32  ;;  %s219_s17 = int_to_ptr.hbm [resolvable:$true] %s218_s17 }
  0x2b   : > { %562 = dma.hbm_to_vmem [thread:$0]  (!%p939_p0), %s219_s17, 128, %s221_s14, %s186_s18  }
  0x2c   : > { %s971_s1 = sshll.u32 (!%p951_p3), %s968_s8, 3  ;;  %s232_s5 = scalar_lea.sflag (!%p951_p3), [#allocation3], %s968_s8 }
  0x2d   : > { %s235_s11 = scalar_lea.vmem (!%p951_p3), [#allocation2], %s971_s1 }
  0x2f   : > { %788 = dma.done.wait (%p916_p8), %s232_s5, 128  }
  0x30   : > { %790 = vsyncadd (%p916_p8), %s232_s5, 4294967168  ;;  %s241_s14 = sand.u32 1, %s892_s20   ;;  %s245_s18 = scalar_lea.vmem [#allocation5], %s971_s1 }
  0x31   : > { %s242_s17 = scalar_lea.sflag [#allocation6], %s241_s14 }
  0x32   : > { %792 = dma.done.wait (%p916_p8), %s242_s17, 256  }
  0x33   : > { %794 = vsyncadd (%p916_p8), %s242_s17, 4294967040  ;;  %vm293_vm0 = vcmask 261120   ;;  %v291_v0 = vld [vmem:[%s245_s18] sm:$0xff]  ;;  %v289_v1 = vld [vmem:[%s235_s11] sm:$0xff]  ;;  %vm320_vm1 = vcmask 64512   ;;  %s255_s20 = scalar_lea.vmem [#allocation7], %s971_s1 }
  0x34   : > { %537 = vmatpush.xpose.msk.msra.mxu0 %vm293_vm0, %v291_v0  ;;  %v290_v2 = vmul.f32 0.17677669, %v289_v1  ;;  %v292_v10 = vld [vmem:[%s255_s20] sm:$0xff]  ;;  %s541_s27 = sshll.u32 %s817_s16, 2  ;;  %s288_s25 = scalar_lea.vmem [#allocation8], %s971_s1 }
  0x35   : > { %363 = vmatpush.msra.mxu1 %v292_v10  ;;  %s380_s6 = sadd.s32 %s813_s15, %s541_s27  ;;  %s384_s29 = sshll.u32 %s288_s25, 4  ;;  %s385_s29 = int_to_ptr.vmem [resolvable:$true] %s384_s29 }
  0x36   : > { %s542_s7 = sshll.u32 %s380_s6, 3  ;;  %s370_s22 = scalar_lea.sflag [#allocation4], %s968_s8 }
  0x37   : > { %538 = vmatmul.msk.f32.vlgmr.msra.gmra.mxu0 %vm293_vm0, %v290_v2  ;;  %s382_s9 = scalar_lea.hbm %s1040_s3, %s542_s7  ;;  %s747_s24 = scalar_lea.hbm %s1040_s3, 64 }
  0x38   : > { %s386_s30 = sshll.u32 %s382_s9, 4  ;;  %s387_s30 = int_to_ptr.hbm [resolvable:$true] %s386_s30 }
  0x39   : > { %s741_s23 = sshra.s32 %s387_s30, 4  ;;  %s742_s23 = int_to_ptr.hbm [resolvable:$true] %s741_s23 }
  0x3a   : > { %s743_s21 = scalar_lea.hbm %s742_s23, 8  ;;  %p748_p7 = scmp.lt.s32.totalorder %s742_s23, %s1040_s3 }
  0x3b   : > { %p744_p4 = scmp.ne.s32.totalorder %s742_s23, %s743_s21  ;;  %p749_p8 = scmp.lt.s32.totalorder %s747_s24, %s743_s21 }
  0x3d   : > { %p745_p5 = pnand %p744_p4, %p920_p9  ;;  %p750_p10 = por %p749_p8, %p748_p7 }
  0x3f   : > { %p746_p6 = pneg %p745_p5 }
  0x41   : > { %p751_p11 = pnand %p750_p10, %p746_p6 }
  0xb4   : > { %v317_v3 = vpop.f32.mrf.mxu0 }
  0xb5   : > { %v321_v4 = vsel %vm320_vm1, %v317_v3, -inf }
  0xb6   : > { %322 = vmax.xlane.f32.xlu0 %v321_v4 }
 0x129   : > { %v323_v5 = vpop.xlane.xlu0 %322 }
 0x12a   : > { %v324_v6 = vsub.f32 %v317_v3, %v323_v5 }
 0x12c   : > { %v325_v7 = vmul.f32 1.442695, %v324_v6 }
 0x12e   : > { %633 = vpow2.f32 %v325_v7 }
 0x134   : > { %v634_v8 = vpop.eup %633 }
 0x135   : > { %v327_v9 = vsel %vm320_vm1, %v634_v8, 0.0 }
 0x136   : > { %328 = vadd.xlane.f32.xlu0 %v327_v9 }
 0x1a9   : > { %v329_v11 = vpop.xlane.xlu0 %328 }
 0x1aa   : > { %635 = vrcp.f32 %v329_v11  ;;  %v341_v15 = vand.u32 2147483648, %v329_v11  ;;  %v339_v17 = vand.u32 2147483647, %v329_v11  ;;  %vm335_vm3 = vweird.f32 %v329_v11 }
 0x1ac   : > { %v342_v19 = vor.u32 1.1754944e-38, %v341_v15  ;;  %vm340_vm5 = vcmp.eq.f32.partialorder %v339_v17, 8.507059e+37 }
 0x1b0   : > { %v636_v12 = vpop.eup %635 }
 0x1b1   : > { %v331_v13 = vmul.f32 %v636_v12, %v329_v11  ;;  %vm336_vm2 = vweird.f32 %v636_v12 }
 0x1b2   : > { %vm337_vm4 = vmor %vm335_vm3, %vm336_vm2 }
 0x1b3   : > { %v332_v14 = vsub.f32 1.0, %v331_v13 }
 0x1b5   : > { %v333_v16 = vmul.f32 %v636_v12, %v332_v14 }
 0x1b7   : > { %v334_v18 = vadd.f32 %v636_v12, %v333_v16 }
 0x1b9   : > { %v338_v20 = vsel %vm337_vm4, %v636_v12, %v334_v18 }
 0x1ba   : > { %v343_v21 = vsel %vm340_vm5, %v342_v19, %v338_v20 }
 0x1bb   : > { %v344_v22 = vmul.f32 %v634_v8, %v343_v21 }
 0x1bd   : > { %539 = vmatmul.msk.f32.vlgmr.msra.gmra.mxu1 %vm320_vm1, %v344_v22 }
 0x23a   : > { %v365_v23 = vpop.f32.mrf.mxu1 }
 0x23b   : > { %368 = vst.msk [vmem:[%s288_s25] sm:$0xff] %vm293_vm0, %v365_v23 }
 0x23c   : > { %754 = shalt.err (!%p751_p11)
}
 0x23d   : > { %551 = dma.vmem_to_hbm [thread:$0]  (%p920_p9), %s385_s29, 128, %s387_s30, %s370_s22  }
 0x23e PF: > { %p568_p13 = scmp.ge.s32.totalorder %s829_s19, 2  ;;  %s398_s8 = sand.u32 1, %s801_s12  }
 0x23f   : > { %s399_s11 = scalar_lea.sflag [#allocation4], %s398_s8 }
 0x240   : > { %p564_p0 = pnand %p568_p13, %p926_p12 }
 0x242   : > { %p565_p1 = pneg %p564_p0 }
 0x244   : > { %796 = dma.done.wait (%p565_p1), %s399_s11, 128  }
 0x245   : > { %798 = vsyncadd (%p565_p1), %s399_s11, 4294967168  ;;  %s22_s19 = sadd.s32 1, %s829_s19   ;;  %s1060_s14 = sld [smem:[#allocation12_spill]] }
 0x246   : > { %p19_p2 = scmp.ge.s32.totalorder %s22_s19, 10   ;;  %s1061_s17 = sld [smem:[#allocation17_spill]] }
 0x247   : > { %s1062_s15 = sld [smem:[#allocation13_spill]]  ;;  %s1066_s12 = smov %s805_s13 }
 0x248   : > { %s1063_s16 = sld [smem:[#allocation14_spill]] }
 0x249   : > { %s1064_s28 = sld [smem:[#allocation15_spill]] }
 0x24a   : > { %s1065_s18 = sld [smem:[#allocation16_spill]] }
 0x24b   : > { %s1067_s13 = smov %s1060_s14  ;;  %21 = sbr.rel (!%p19_p2) target bundleno = 11 (0xb), region = 101 }
 0x24c   : > { %s1068_s14 = smov %s1061_s17 }
 0x24f   : > { %s1069_s17 = smov %s1064_s28 }
 0x250   :  { %405 = vsyncpa [#allocation3], 1 }
 0x251   :  { %407 = vsyncpa [#allocation3 + $0x1], 1 }
 0x252   :  { %408 = vsyncpa [#allocation6], 1 }
 0x253   :  { %410 = vsyncpa [#allocation6 + $0x1], 1 }
 0x254   :  { %411 = vsyncpa [#allocation4], 1 }
 0x255   :  { %413 = vsyncpa [#allocation4 + $0x1], 1 }

</bundles_post_ra>
